<compile_context>
chip_gen: v7x
topology: tpu7x:2x2x1
jax: 0.10.0
libtpu: 0.0.40
codegen_flags: <defaults>
</compile_context>

<pallas_src>
import jax
import jax.numpy as jnp
from jax.experimental import pallas as pl
from jax.experimental.pallas import tpu as pltpu

GIN_EPS = 0.0  # PyG GINConv default eps (train_eps=False)


# ------------------------------------------------------------------ kernel ---
def fused_gin_kernel(a_ref, x_ref, p_ref, w11_ref, wslab_ref, fw2_ref, bias_ref,
                     o_ref):
    """Fused forward on the batched (block-diagonal) graph.

    a_ref    : (NP, NP)   bf16  A' = block_diag(A1, A2) + (1+eps) * I
    x_ref    : (NP, FP)   bf16  stacked node features [X1; X2]
    p_ref    : (2*GP, NP) bf16  stacked pooling matrices [P1-part; P2-part]
    w11_ref  : (FP, HP)   bf16  gin1 first linear
    wslab_ref: (5*HP, HP) bf16  [w12; w21; w22; fc1_Wa; fc1_Wb]
    fw2_ref  : (HP, OP)   bf16  fc2 weight
    bias_ref : (8, BP)    f32   rows: b11, b12, b21, b22, fc1_b, fc2_b, 0, 0
    o_ref    : (GP, OP)   f32   sigmoid output (real data in [:G, :1])
    """
    f32, bf16 = jnp.float32, jnp.bfloat16
    HP = wslab_ref.shape[1]
    OP = o_ref.shape[1]
    GP = p_ref.shape[0] // 2

    a = a_ref[...]
    biases = bias_ref[...]                       # tiny (8, BP) f32, load once

    def bias(i, width):
        return biases[i:i + 1, :width]           # (1, width), static slice

    def wslab(k):
        return wslab_ref[k * HP:(k + 1) * HP, :]  # static ref slice -> one tile load

    def gin_layer(h_b, w1, b1i, w2, b2i):
        # MLP(A' @ h) with the (1+eps) self-loop already folded into A'.
        s = jnp.dot(a, h_b, preferred_element_type=f32)
        t = jnp.dot(s.astype(bf16), w1, preferred_element_type=f32) + bias(b1i, HP)
        t = jnp.maximum(t, 0.0)
        u = jnp.dot(t.astype(bf16), w2, preferred_element_type=f32) + bias(b2i, HP)
        return u.astype(bf16)

    h = gin_layer(x_ref[...], w11_ref[...], 0, wslab(0), 1)   # shared gin1
    h = gin_layer(h, wslab(1), 2, wslab(2), 3)                # shared gin2

    # Merged global_add_pool: one MXU pass, then free static row slices.
    g = jnp.dot(p_ref[...], h, preferred_element_type=f32)    # (2*GP, HP)
    g1 = g[:GP].astype(bf16)
    g2 = g[GP:].astype(bf16)

    # cat([g1, g2], dim=1) @ fc1_W  ==  g1 @ fc1_Wa + g2 @ fc1_Wb
    z = (jnp.dot(g1, wslab(3), preferred_element_type=f32)
         + jnp.dot(g2, wslab(4), preferred_element_type=f32)
         + bias(4, HP))
    z = jnp.maximum(z, 0.0)
    z = jnp.dot(z.astype(bf16), fw2_ref[...], preferred_element_type=f32) + bias(5, OP)
    o_ref[...] = jax.nn.sigmoid(z)


# ----------------------------------------------------------------- wrapper ---
def _ceil_to(x, m):
    return ((x + m - 1) // m) * m


def _pad2(x, shape):
    out = jnp.zeros(shape, x.dtype)
    return out.at[:x.shape[0], :x.shape[1]].set(x)


def pack_params(params):
    """One-time packing of the (shared) weights into padded bf16/f32 slabs."""
    w11, b11, w12, b12 = params["gin1"]
    w21, b21, w22, b22 = params["gin2"]
    fc1_W, fc1_b = params["fc1_W"], params["fc1_b"]
    fc2_W, fc2_b = params["fc2_W"], params["fc2_b"]

    F, H = w11.shape
    FP, HP = _ceil_to(F, 128), _ceil_to(H, 128)
    OP = 128                                   # lane-dense output columns
    BP = max(HP, OP)
    bf16 = jnp.bfloat16

    fwa, fwb = fc1_W[:H], fc1_W[H:]            # split for the concat-free fc1

    wslab = jnp.concatenate(
        [_pad2(w12, (HP, HP)), _pad2(w21, (HP, HP)), _pad2(w22, (HP, HP)),
         _pad2(fwa, (HP, HP)), _pad2(fwb, (HP, HP))], axis=0).astype(bf16)

    biases = jnp.zeros((8, BP), jnp.float32)
    for i, b in enumerate([b11, b12, b21, b22, fc1_b, fc2_b]):
        biases = biases.at[i, :b.shape[1]].set(b[0])

    return {
        "w11": _pad2(w11, (FP, HP)).astype(bf16),
        "wslab": wslab,
        "fw2": _pad2(fc2_W, (HP, OP)).astype(bf16),
        "bias": biases,
    }


def gin_subgraph_model(packed, A1, X1, P1, A2, X2, P2):
    """Forward pass matching GINSubgraphModel (weights shared between the two graphs)."""
    N1, F = X1.shape
    N2 = X2.shape[0]
    G = P1.shape[0]
    NT = N1 + N2
    NP = _ceil_to(NT, 128)
    GP = _ceil_to(G, 8)
    FP, HP = packed["w11"].shape
    OP = packed["fw2"].shape[1]
    assert F <= FP

    bf16 = jnp.bfloat16
    scale = jnp.bfloat16(1.0 + GIN_EPS)

    # Block-diagonal adjacency with the GIN self-loop folded in (0/1 -> bf16 exact).
    A = (jnp.zeros((NP, NP), bf16)
         .at[:N1, :N1].set(A1.astype(bf16))
         .at[N1:NT, N1:NT].set(A2.astype(bf16)))
    A = A + scale * jnp.eye(NP, dtype=bf16)

    # Stacked node features and merged pooling matrix, built directly in bf16.
    X = (jnp.zeros((NP, FP), bf16)
         .at[:N1, :F].set(X1.astype(bf16))
         .at[N1:NT, :F].set(X2.astype(bf16)))
    P = (jnp.zeros((2 * GP, NP), bf16)
         .at[:G, :N1].set(P1.astype(bf16))
         .at[GP:GP + G, N1:NT].set(P2.astype(bf16)))

    out = pl.pallas_call(
        fused_gin_kernel,
        out_shape=jax.ShapeDtypeStruct((GP, OP), jnp.float32),
        in_specs=[pl.BlockSpec(memory_space=pltpu.MemorySpace.VMEM)] * 7,
        out_specs=pl.BlockSpec(memory_space=pltpu.MemorySpace.VMEM),
    )(A, X, P, packed["w11"], packed["wslab"], packed["fw2"], packed["bias"])
    return out[:G, :1]


# -------------------------------------------------------------- pure-JAX ref --
def reference(params, A1, X1, P1, A2, X2, P2):
    def layer(A, X, W1, b1, W2, b2):
        h = (1.0 + GIN_EPS) * X + A @ X
        h = jnp.maximum(h @ W1 + b1, 0.0)
        return h @ W2 + b2

    h1 = layer(A1, X1, *params["gin1"])
    h1 = layer(A1, h1, *params["gin2"])
    h2 = layer(A2, X2, *params["gin1"])
    h2 = layer(A2, h2, *params["gin2"])
    g = jnp.concatenate([P1 @ h1, P2 @ h2], axis=1)
    h = jnp.maximum(g @ params["fc1_W"] + params["fc1_b"], 0.0)
    return jax.nn.sigmoid(h @ params["fc2_W"] + params["fc2_b"])


# --------------------------------------------------------------------- main --
def build_graph(n_nodes, n_graphs):
    """Synthetic batched graph: ring edges per graph; dense A[dst,src] and pool P[g,n]."""
    per = n_nodes // n_graphs
    src, dst = [], []
    for g in range(n_graphs):
        off = g * per
        for i in range(per):
            a, b = off + i, off + (i + 1) % per
            src += [a, b]
            dst += [b, a]
    src = jnp.array(src, dtype=jnp.int32)
    dst = jnp.array(dst, dtype=jnp.int32)
    A = jnp.zeros((n_nodes, n_nodes), jnp.float32).at[dst, src].add(1.0)
    batch = jnp.repeat(jnp.arange(n_graphs, dtype=jnp.int32), per)
    P = (batch[None, :] == jnp.arange(n_graphs, dtype=jnp.int32)[:, None]).astype(jnp.float32)
    return A, P


if __name__ == "__main__":
    key = jax.random.PRNGKey(0)
    N, G = 16, 2          # 16 nodes per graph-batch, 2 graphs each
    input_dim, hidden = 8, 32

    ks = jax.random.split(key, 16)

    def lin(k, fin, fout):
        kw, kb = jax.random.split(k)
        W = 0.1 * jax.random.normal(kw, (fin, fout), jnp.float32)
        b = 0.1 * jax.random.normal(kb, (1, fout), jnp.float32)
        return W, b

    g1_W1, g1_b1 = lin(ks[0], input_dim, hidden)
    g1_W2, g1_b2 = lin(ks[1], hidden, hidden)
    g2_W1, g2_b1 = lin(ks[2], hidden, hidden)
    g2_W2, g2_b2 = lin(ks[3], hidden, hidden)
    fc1_W, fc1_b = lin(ks[4], 2 * hidden, hidden)
    fc2_W, fc2_b = lin(ks[5], hidden, 1)

    params = {
        "gin1": (g1_W1, g1_b1, g1_W2, g1_b2),
        "gin2": (g2_W1, g2_b1, g2_W2, g2_b2),
        "fc1_W": fc1_W, "fc1_b": fc1_b,
        "fc2_W": fc2_W, "fc2_b": fc2_b,
    }

    X1 = jax.random.normal(ks[6], (N, input_dim), jnp.float32)
    X2 = jax.random.normal(ks[7], (N, input_dim), jnp.float32)
    A1, P1 = build_graph(N, G)
    A2, P2 = build_graph(N, G)

    packed = jax.tree_util.tree_map(jax.device_put, pack_params(params))  # once, at init

    fwd = jax.jit(gin_subgraph_model)
    out = jax.block_until_ready(fwd(packed, A1, X1, P1, A2, X2, P2))

    ref = reference(params, A1, X1, P1, A2, X2, P2)
    assert out.shape == (G, 1), out.shape
    # bf16 matmul operands with f32 accumulation -> slightly relaxed tolerance
    assert jnp.allclose(out, ref, atol=2e-2, rtol=2e-2), (out, ref)

    print("KERNEL_OK")
</pallas_src>

<mosaic_0001>
module attributes {stable_mosaic.version = 11 : i64} {
  func.func @fused_gin_kernel(%arg0: memref<128x128xbf16, #tpu.memory_space<vmem>>, %arg1: memref<128x128xbf16, #tpu.memory_space<vmem>>, %arg2: memref<16x128xbf16, #tpu.memory_space<vmem>>, %arg3: memref<128x128xbf16, #tpu.memory_space<vmem>>, %arg4: memref<640x128xbf16, #tpu.memory_space<vmem>>, %arg5: memref<128x128xbf16, #tpu.memory_space<vmem>>, %arg6: memref<8x128xf32, #tpu.memory_space<vmem>>, %arg7: memref<8x128xf32, #tpu.memory_space<vmem>>) attributes {dimension_semantics = [], scalar_prefetch = 0 : i64, scratch_operands = 0 : i64, tpu.core_type = #tpu.core_type<tc>} {
    %c0 = arith.constant 0 : index
    %c0_0 = arith.constant 0 : index
    %0 = vector.load %arg0[%c0, %c0_0] : memref<128x128xbf16, #tpu.memory_space<vmem>>, vector<128x128xbf16>
    %c0_1 = arith.constant 0 : index
    %c0_2 = arith.constant 0 : index
    %1 = vector.load %arg6[%c0_1, %c0_2] : memref<8x128xf32, #tpu.memory_space<vmem>>, vector<8x128xf32>
    %c0_3 = arith.constant 0 : index
    %c0_4 = arith.constant 0 : index
    %2 = vector.load %arg1[%c0_3, %c0_4] : memref<128x128xbf16, #tpu.memory_space<vmem>>, vector<128x128xbf16>
    %c0_5 = arith.constant 0 : index
    %c0_6 = arith.constant 0 : index
    %3 = vector.load %arg3[%c0_5, %c0_6] : memref<128x128xbf16, #tpu.memory_space<vmem>>, vector<128x128xbf16>
    %c0_7 = arith.constant 0 : index
    %c0_8 = arith.constant 0 : index
    %4 = vector.load %arg4[%c0_7, %c0_8] : memref<640x128xbf16, #tpu.memory_space<vmem>>, vector<128x128xbf16>
    %cst = arith.constant dense<0.000000e+00> : vector<128x128xf32>
    %5 = tpu.matmul %0, %2, %cst {dimension_numbers = #tpu.dot_dimension_numbers<[1], [0], [0], [1], [0, 0, 1, 1], [], []>} : vector<128x128xbf16>, vector<128x128xbf16>, vector<128x128xf32> -> vector<128x128xf32>
    %6 = arith.truncf %5 : vector<128x128xf32> to vector<128x128xbf16>
    %cst_9 = arith.constant dense<0.000000e+00> : vector<128x128xf32>
    %7 = tpu.matmul %6, %3, %cst_9 {dimension_numbers = #tpu.dot_dimension_numbers<[1], [0], [0], [1], [0, 0, 1, 1], [], []>} : vector<128x128xbf16>, vector<128x128xbf16>, vector<128x128xf32> -> vector<128x128xf32>
    %8 = vector.extract_strided_slice %1 {offsets = [0, 0], sizes = [1, 128], strides = [1, 1]} : vector<8x128xf32> to vector<1x128xf32>
    %9 = vector.broadcast %8 : vector<1x128xf32> to vector<128x128xf32>
    %10 = arith.addf %7, %9 : vector<128x128xf32>
    %cst_10 = arith.constant 0.000000e+00 : f32
    %11 = vector.broadcast %cst_10 : f32 to vector<128x128xf32>
    %12 = arith.maximumf %10, %11 : vector<128x128xf32>
    %13 = arith.truncf %12 : vector<128x128xf32> to vector<128x128xbf16>
    %cst_11 = arith.constant dense<0.000000e+00> : vector<128x128xf32>
    %14 = tpu.matmul %13, %4, %cst_11 {dimension_numbers = #tpu.dot_dimension_numbers<[1], [0], [0], [1], [0, 0, 1, 1], [], []>} : vector<128x128xbf16>, vector<128x128xbf16>, vector<128x128xf32> -> vector<128x128xf32>
    %15 = vector.extract_strided_slice %1 {offsets = [1, 0], sizes = [1, 128], strides = [1, 1]} : vector<8x128xf32> to vector<1x128xf32>
    %16 = vector.broadcast %15 : vector<1x128xf32> to vector<128x128xf32>
    %17 = arith.addf %14, %16 : vector<128x128xf32>
    %18 = arith.truncf %17 : vector<128x128xf32> to vector<128x128xbf16>
    %c128 = arith.constant 128 : index
    %c0_12 = arith.constant 0 : index
    %19 = vector.load %arg4[%c128, %c0_12] : memref<640x128xbf16, #tpu.memory_space<vmem>>, vector<128x128xbf16>
    %c256 = arith.constant 256 : index
    %c0_13 = arith.constant 0 : index
    %20 = vector.load %arg4[%c256, %c0_13] : memref<640x128xbf16, #tpu.memory_space<vmem>>, vector<128x128xbf16>
    %cst_14 = arith.constant dense<0.000000e+00> : vector<128x128xf32>
    %21 = tpu.matmul %0, %18, %cst_14 {dimension_numbers = #tpu.dot_dimension_numbers<[1], [0], [0], [1], [0, 0, 1, 1], [], []>} : vector<128x128xbf16>, vector<128x128xbf16>, vector<128x128xf32> -> vector<128x128xf32>
    %22 = arith.truncf %21 : vector<128x128xf32> to vector<128x128xbf16>
    %cst_15 = arith.constant dense<0.000000e+00> : vector<128x128xf32>
    %23 = tpu.matmul %22, %19, %cst_15 {dimension_numbers = #tpu.dot_dimension_numbers<[1], [0], [0], [1], [0, 0, 1, 1], [], []>} : vector<128x128xbf16>, vector<128x128xbf16>, vector<128x128xf32> -> vector<128x128xf32>
    %24 = vector.extract_strided_slice %1 {offsets = [2, 0], sizes = [1, 128], strides = [1, 1]} : vector<8x128xf32> to vector<1x128xf32>
    %25 = vector.broadcast %24 : vector<1x128xf32> to vector<128x128xf32>
    %26 = arith.addf %23, %25 : vector<128x128xf32>
    %cst_16 = arith.constant 0.000000e+00 : f32
    %27 = vector.broadcast %cst_16 : f32 to vector<128x128xf32>
    %28 = arith.maximumf %26, %27 : vector<128x128xf32>
    %29 = arith.truncf %28 : vector<128x128xf32> to vector<128x128xbf16>
    %cst_17 = arith.constant dense<0.000000e+00> : vector<128x128xf32>
    %30 = tpu.matmul %29, %20, %cst_17 {dimension_numbers = #tpu.dot_dimension_numbers<[1], [0], [0], [1], [0, 0, 1, 1], [], []>} : vector<128x128xbf16>, vector<128x128xbf16>, vector<128x128xf32> -> vector<128x128xf32>
    %31 = vector.extract_strided_slice %1 {offsets = [3, 0], sizes = [1, 128], strides = [1, 1]} : vector<8x128xf32> to vector<1x128xf32>
    %32 = vector.broadcast %31 : vector<1x128xf32> to vector<128x128xf32>
    %33 = arith.addf %30, %32 : vector<128x128xf32>
    %34 = arith.truncf %33 : vector<128x128xf32> to vector<128x128xbf16>
    %c0_18 = arith.constant 0 : index
    %c0_19 = arith.constant 0 : index
    %35 = vector.load %arg2[%c0_18, %c0_19] : memref<16x128xbf16, #tpu.memory_space<vmem>>, vector<16x128xbf16>
    %cst_20 = arith.constant dense<0.000000e+00> : vector<16x128xf32>
    %36 = tpu.matmul %35, %34, %cst_20 {dimension_numbers = #tpu.dot_dimension_numbers<[1], [0], [0], [1], [0, 0, 1, 1], [], []>} : vector<16x128xbf16>, vector<128x128xbf16>, vector<16x128xf32> -> vector<16x128xf32>
    %37 = vector.extract_strided_slice %36 {offsets = [0, 0], sizes = [8, 128], strides = [1, 1]} : vector<16x128xf32> to vector<8x128xf32>
    %38 = arith.truncf %37 : vector<8x128xf32> to vector<8x128xbf16>
    %39 = vector.extract_strided_slice %36 {offsets = [8, 0], sizes = [8, 128], strides = [1, 1]} : vector<16x128xf32> to vector<8x128xf32>
    %40 = arith.truncf %39 : vector<8x128xf32> to vector<8x128xbf16>
    %c384 = arith.constant 384 : index
    %c0_21 = arith.constant 0 : index
    %41 = vector.load %arg4[%c384, %c0_21] : memref<640x128xbf16, #tpu.memory_space<vmem>>, vector<128x128xbf16>
    %cst_22 = arith.constant dense<0.000000e+00> : vector<8x128xf32>
    %42 = tpu.matmul %38, %41, %cst_22 {dimension_numbers = #tpu.dot_dimension_numbers<[1], [0], [0], [1], [0, 0, 1, 1], [], []>} : vector<8x128xbf16>, vector<128x128xbf16>, vector<8x128xf32> -> vector<8x128xf32>
    %c512 = arith.constant 512 : index
    %c0_23 = arith.constant 0 : index
    %43 = vector.load %arg4[%c512, %c0_23] : memref<640x128xbf16, #tpu.memory_space<vmem>>, vector<128x128xbf16>
    %cst_24 = arith.constant dense<0.000000e+00> : vector<8x128xf32>
    %44 = tpu.matmul %40, %43, %cst_24 {dimension_numbers = #tpu.dot_dimension_numbers<[1], [0], [0], [1], [0, 0, 1, 1], [], []>} : vector<8x128xbf16>, vector<128x128xbf16>, vector<8x128xf32> -> vector<8x128xf32>
    %45 = arith.addf %42, %44 : vector<8x128xf32>
    %46 = vector.extract_strided_slice %1 {offsets = [4, 0], sizes = [1, 128], strides = [1, 1]} : vector<8x128xf32> to vector<1x128xf32>
    %47 = vector.broadcast %46 : vector<1x128xf32> to vector<8x128xf32>
    %48 = arith.addf %45, %47 : vector<8x128xf32>
    %cst_25 = arith.constant 0.000000e+00 : f32
    %49 = vector.broadcast %cst_25 : f32 to vector<8x128xf32>
    %50 = arith.maximumf %48, %49 : vector<8x128xf32>
    %51 = arith.truncf %50 : vector<8x128xf32> to vector<8x128xbf16>
    %c0_26 = arith.constant 0 : index
    %c0_27 = arith.constant 0 : index
    %52 = vector.load %arg5[%c0_26, %c0_27] : memref<128x128xbf16, #tpu.memory_space<vmem>>, vector<128x128xbf16>
    %cst_28 = arith.constant dense<0.000000e+00> : vector<8x128xf32>
    %53 = tpu.matmul %51, %52, %cst_28 {dimension_numbers = #tpu.dot_dimension_numbers<[1], [0], [0], [1], [0, 0, 1, 1], [], []>} : vector<8x128xbf16>, vector<128x128xbf16>, vector<8x128xf32> -> vector<8x128xf32>
    %54 = vector.extract_strided_slice %1 {offsets = [5, 0], sizes = [1, 128], strides = [1, 1]} : vector<8x128xf32> to vector<1x128xf32>
    %55 = vector.broadcast %54 : vector<1x128xf32> to vector<8x128xf32>
    %56 = arith.addf %53, %55 : vector<8x128xf32>
    %57 = arith.negf %56 : vector<8x128xf32>
    %58 = math.exp %57 : vector<8x128xf32>
    %cst_29 = arith.constant 1.000000e+00 : f32
    %59 = vector.broadcast %cst_29 : f32 to vector<8x128xf32>
    %60 = arith.addf %59, %58 : vector<8x128xf32>
    %61 = arith.divf %59, %60 : vector<8x128xf32>
    %c0_30 = arith.constant 0 : index
    %c0_31 = arith.constant 0 : index
    %62 = vector.load %arg7[%c0_30, %c0_31] : memref<8x128xf32, #tpu.memory_space<vmem>>, vector<8x128xf32>
    tpu.vector_store %arg7[%c0_30, %c0_31], %61 {strides = array<i32>} : memref<8x128xf32, #tpu.memory_space<vmem>>, vector<8x128xf32>,
    return
  }
}

</mosaic_0001>

<bundles_post_ra>
// kernel: gin_subgraph_model.1
= control target key start
LH: loop header
LB: loop body
LE: loop exit
PB: predicated region body
PF: predicated region fallthrough
CT: control target
= control target key end

     0   :  { %12 = vsyncpa [#allocation3], 0  ;;  %s2074_s24 = smov [#allocation2]   ;;  %s2420_s0 = inlined_call_operand.vmem [shape: bf16[128,128], index: 0, kind: input, shape index: {}]   ;;  %s2421_s1 = inlined_call_operand.vmem [shape: bf16[128,128], index: 1, kind: input, shape index: {}]   ;;  %s2422_s2 = inlined_call_operand.vmem [shape: bf16[16,128], index: 2, kind: input, shape index: {}]   ;;  %s2423_s3 = inlined_call_operand.vmem [shape: bf16[128,128], index: 3, kind: input, shape index: {}]   ;;  %s2424_s4 = inlined_call_operand.vmem [shape: bf16[640,128], index: 4, kind: input, shape index: {}]   ;;  %s2425_s5 = inlined_call_operand.hbm [shape: bf16[128,128], index: 5, kind: input, shape index: {}]   ;;  %s2426_s6 = inlined_call_operand.vmem [shape: f32[8,128], index: 6, kind: input, shape index: {}]   ;;  %s2427_s7 = inlined_call_operand.vmem [shape: f32[8,128], index: 7, kind: output, shape index: {}]  }
   0x1   :  { %s28_s25 = sshll.u32 %s2074_s24, 4  ;;  %s2050_s28 = scalar_lea.hbm %s2425_s5, 1024  ;;  %s29_s25 = int_to_ptr.vmem [resolvable:$true] %s28_s25 }
   0x2   :  { %p2051_p0 = scmp.ne.s32.totalorder %s2425_s5, %s2050_s28  ;;  %p2054_p1 = scmp.lt.u32.totalorder %s2050_s28, %s2425_s5 }
   0x4   :  { %p2056_p2 = pnand %p2054_p1, %p2051_p0 }
   0x6   :  { %2059 = shalt.err (!%p2056_p2)
}
   0x7   :  { %s2060_s10 = scalar_lea.vmem %s29_s25, 1024  ;;  %p2065_p4 = scmp.lt.s32.totalorder %s29_s25, %s29_s25 }
   0x8   :  { %p2061_p3 = scmp.ne.s32.totalorder %s29_s25, %s2060_s10  ;;  %p2066_p5 = scmp.lt.s32.totalorder %s2060_s10, %s2060_s10 }
   0xa   :  { %p2067_p6 = por %p2066_p5, %p2065_p4 }
   0xc   :  { %p2068_p7 = pnand %p2067_p6, %p2061_p3 }
   0xe   :  { %2071 = shalt.err (!%p2068_p7)
}
   0xf   :  { %s2075_s11 = smov 64   ;;  %s2076_s12 = smov 4  }
  0x10   :  { %34 = dma.hbm_to_vmem [thread:$0]  %s2425_s5, 1024, %s29_s25, [#allocation3], %s2075_s11, %s2075_s11, %s2076_s12  }
  0x11   :  { %2072 = dma.done.wait [#allocation3], 1024  }
  0x12   :  { %2073 = vsyncadd [#allocation3], 4294966272  ;;  %v1973_v0 = vld [vmem:[%s2421_s1] sm:$0xff]   ;;  %v1974_v1 = vld [vmem:[%s2421_s1 + $0x8] sm:$0xff]   ;;  %v307_v56 = vlaneseq  ;;  %vm2078_vm0 = vmmov 0  }
  0x13   :  { %1696 = vmatprep.subr.bf16.mxu0 %v1973_v0  ;;  %v1975_v2 = vld [vmem:[%s2421_s1 + $0x10] sm:$0xff]   ;;  %v1976_v3 = vld [vmem:[%s2421_s1 + $0x18] sm:$0xff]   ;;  %v2146_v4 = vld [vmem:[%s2420_s0] sm:$0xff]  }
  0x14   :  { %1697 = vmatpush3.bf16.msra.mxu0 %v1973_v0  ;;  %1712 = vmatprep.mubr.bf16.mxu0 %v2146_v4  ;;  %v1977_v5 = vld [vmem:[%s2421_s1 + $0x20] sm:$0xff]   ;;  %v1978_v6 = vld [vmem:[%s2421_s1 + $0x28] sm:$0xff]   ;;  %v1979_v9 = vld [vmem:[%s2421_s1 + $0x30] sm:$0xff]   ;;  %v2252_v57 = vshrl.u32 %v307_v56, 7 }
  0x15   :  { %1698 = vmatprep.subr.bf16.mxu0 %v1974_v1  ;;  %v1989_v7 = vld [vmem:[%s2423_s3] sm:$0xff]   ;;  %v1990_v8 = vld [vmem:[%s2423_s3 + $0x8] sm:$0xff]   ;;  %v1991_v10 = vld [vmem:[%s2423_s3 + $0x10] sm:$0xff]  }
  0x16   :  { %1728 = vmatprep.subr.bf16.mxu1 %v1989_v7  ;;  %v1980_v11 = vld [vmem:[%s2421_s1 + $0x38] sm:$0xff]   ;;  %v1993_v13 = vld [vmem:[%s2423_s3 + $0x20] sm:$0xff]   ;;  %v2179_v14 = vld [vmem:[%s2420_s0 + $0x8] sm:$0xff]   ;;  %v309_v58 = vsub.s32 0, %v2252_v57 }
  0x17   :  { %1729 = vmatpush3.bf16.msra.mxu1 %v1989_v7  ;;  %v1992_v12 = vld [vmem:[%s2423_s3 + $0x18] sm:$0xff]   ;;  %v2184_v15 = vld [vmem:[%s2420_s0 + $0x10] sm:$0xff]   ;;  %v1994_v16 = vld [vmem:[%s2423_s3 + $0x28] sm:$0xff]  }
  0x18   :  { %1699 = vmatpush3.bf16.msra.mxu0 %v1974_v1  ;;  %1730 = vmatprep.subr.bf16.mxu1 %v1990_v8  ;;  %v1995_v17 = vld [vmem:[%s2423_s3 + $0x30] sm:$0xff]   ;;  %v2197_v18 = vld [vmem:[%s2420_s0 + $0x18] sm:$0xff]   ;;  %v2202_v19 = vld [vmem:[%s2420_s0 + $0x20] sm:$0xff]  }
  0x19   :  { %1700 = vmatprep.subr.bf16.mxu0 %v1975_v2  ;;  %v2209_v20 = vld [vmem:[%s2420_s0 + $0x28] sm:$0xff]   ;;  %v2214_v21 = vld [vmem:[%s2420_s0 + $0x30] sm:$0xff]   ;;  %v2221_v22 = vld [vmem:[%s2420_s0 + $0x38] sm:$0xff]  }
  0x1a   :  { %v1996_v23 = vld [vmem:[%s2423_s3 + $0x38] sm:$0xff]   ;;  %v1997_v24 = vld [vmem:[%s2424_s4] sm:$0xff]   ;;  %v1998_v25 = vld [vmem:[%s2424_s4 + $0x8] sm:$0xff]  }
  0x1b   :  { %1731 = vmatpush3.bf16.msra.mxu1 %v1990_v8  ;;  %v1999_v26 = vld [vmem:[%s2424_s4 + $0x10] sm:$0xff]   ;;  %v2000_v27 = vld [vmem:[%s2424_s4 + $0x18] sm:$0xff]   ;;  %v2001_v28 = vld [vmem:[%s2424_s4 + $0x20] sm:$0xff]  }
  0x1c   :  { %1701 = vmatpush3.bf16.msra.mxu0 %v1975_v2  ;;  %1732 = vmatprep.subr.bf16.mxu1 %v1991_v10  ;;  %v2002_v29 = vld [vmem:[%s2424_s4 + $0x28] sm:$0xff]   ;;  %v2003_v54 = vld [vmem:[%s2424_s4 + $0x30] sm:$0xff]   ;;  %v2004_v55 = vld [vmem:[%s2424_s4 + $0x38] sm:$0xff]  }
  0x1d   :  { %1702 = vmatprep.subr.bf16.mxu0 %v1976_v3  ;;  %v2258_v59 = vld [vmem:[%s2426_s6] sm:$0xff] }
  0x1e   :  { %v310_v60 = vrot.slane %v2258_v59, %v309_v58 }
  0x1f   :  { %1733 = vmatpush3.bf16.msra.mxu1 %v1991_v10 }
  0x20   :  { %1703 = vmatpush3.bf16.msra.mxu0 %v1976_v3  ;;  %1734 = vmatprep.subr.bf16.mxu1 %v1992_v12 }
  0x21   :  { %1704 = vmatprep.subr.bf16.mxu0 %v1977_v5 }
  0x23   :  { %1735 = vmatpush3.bf16.msra.mxu1 %v1992_v12 }
  0x24   :  { %1705 = vmatpush3.bf16.msra.mxu0 %v1977_v5  ;;  %1736 = vmatprep.subr.bf16.mxu1 %v1993_v13 }
  0x25   :  { %1706 = vmatprep.subr.bf16.mxu0 %v1978_v6 }
  0x27   :  { %1737 = vmatpush3.bf16.msra.mxu1 %v1993_v13 }
  0x28   :  { %1707 = vmatpush3.bf16.msra.mxu0 %v1978_v6  ;;  %1738 = vmatprep.subr.bf16.mxu1 %v1994_v16 }
  0x29   :  { %1708 = vmatprep.subr.bf16.mxu0 %v1979_v9 }
  0x2b   :  { %1739 = vmatpush3.bf16.msra.mxu1 %v1994_v16 }
  0x2c   :  { %1709 = vmatpush3.bf16.msra.mxu0 %v1979_v9  ;;  %1740 = vmatprep.subr.bf16.mxu1 %v1995_v17 }
  0x2d   :  { %1710 = vmatprep.subr.bf16.mxu0 %v1980_v11 }
  0x2f   :  { %1741 = vmatpush3.bf16.msra.mxu1 %v1995_v17 }
  0x30   :  { %1711 = vmatpush3.bf16.msra.mxu0 %v1980_v11  ;;  %1742 = vmatprep.subr.bf16.mxu1 %v1996_v23 }
  0x31   :  { %1760 = vmatprep.subr.bf16.mxu0 %v1997_v24 }
  0x33   :  { %1713 = vmatmul.mubr.bf16.vlgmr.msra.gmra.mrb[0].mxu0 %v2179_v14  ;;  %1743 = vmatpush3.bf16.msra.mxu1 %v1996_v23 }
  0x34   :  { %1716 = vmatprep.mubr.bf16.mxu0 %v2184_v15  ;;  %1761 = vmatpush3.bf16.msra.mxu0 %v1997_v24 }
  0x35   :  { %1762 = vmatprep.subr.bf16.mxu0 %v1998_v25 }
  0x38   :  { %1763 = vmatpush3.bf16.msra.mxu0 %v1998_v25 }
  0x39   :  { %1764 = vmatprep.subr.bf16.mxu0 %v1999_v26 }
  0x3b   :  { %1717 = vmatmul.mubr.bf16.gmra.mrb[4].mxu0 %v2197_v18 }
  0x3c   :  { %1720 = vmatprep.mubr.bf16.mxu0 %v2202_v19  ;;  %1765 = vmatpush3.bf16.msra.mxu0 %v1999_v26 }
  0x3d   :  { %1766 = vmatprep.subr.bf16.mxu0 %v2000_v27 }
  0x40   :  { %1767 = vmatpush3.bf16.msra.mxu0 %v2000_v27 }
  0x41   :  { %1768 = vmatprep.subr.bf16.mxu0 %v2001_v28 }
  0x43   :  { %1721 = vmatmul.mubr.bf16.gmra.mrb[8].mxu0 %v2209_v20 }
  0x44   :  { %1724 = vmatprep.mubr.bf16.mxu0 %v2214_v21  ;;  %1769 = vmatpush3.bf16.msra.mxu0 %v2001_v28 }
  0x45   :  { %1770 = vmatprep.subr.bf16.mxu0 %v2002_v29 }
  0x48   :  { %1771 = vmatpush3.bf16.msra.mxu0 %v2002_v29 }
  0x49   :  { %1772 = vmatprep.subr.bf16.mxu0 %v2003_v54 }
  0x4b   :  { %1725 = vmatmul.mubr.bf16.gmra.mrb[12].mxu0 %v2221_v22 }
  0x4c   :  { %1773 = vmatpush3.bf16.msra.mxu0 %v2003_v54 }
  0x4d   :  { %1774 = vmatprep.subr.bf16.mxu0 %v2004_v55 }
  0x50   :  { %1775 = vmatpush3.bf16.msra.mxu0 %v2004_v55 }
 0x106   :  { %v1714_v30 = vpop.f32.mrb[0].mxu0 }
 0x107   :  { %v236_v31 = vpop.f32.mrb[1].mxu0 }
 0x108   :  { %v1715_v32 = vpop.f32.mrb[2].mxu0 }
 0x109   :  { %v300_v33 = vpack.c.bf16 %v1715_v32, %v1714_v30  ;;  %v239_v34 = vpop.f32.mrb[3].mxu0 }
 0x10a   :  { %v299_v35 = vpack.c.bf16 %v239_v34, %v236_v31 }
 0x10c   :  { %1744 = vmatprep.mubr.bf16.mxu1 %v299_v35 }
 0x10d   :  { %1745 = vmatmul.mubr.bf16.vlgmr.msra.gmra.mrb[0].mxu1 %v300_v33 }
 0x10e   :  { %v1718_v36 = vpop.f32.mrb[4].mxu0 }
 0x10f   :  { %v252_v37 = vpop.f32.mrb[5].mxu0 }
 0x110   :  { %v1719_v38 = vpop.f32.mrb[6].mxu0 }
 0x111   :  { %v302_v39 = vpack.c.bf16 %v1719_v38, %v1718_v36  ;;  %v255_v40 = vpop.f32.mrb[7].mxu0 }
 0x112   :  { %v301_v41 = vpack.c.bf16 %v255_v40, %v252_v37 }
 0x114   :  { %1748 = vmatprep.mubr.bf16.mxu1 %v301_v41 }
 0x115   :  { %1749 = vmatmul.mubr.bf16.gmra.mrb[4].mxu1 %v302_v39 }
 0x116   :  { %v1722_v42 = vpop.f32.mrb[8].mxu0 }
 0x117   :  { %v268_v43 = vpop.f32.mrb[9].mxu0 }
 0x118   :  { %v1723_v44 = vpop.f32.mrb[10].mxu0 }
 0x119   :  { %v304_v45 = vpack.c.bf16 %v1723_v44, %v1722_v42  ;;  %v271_v46 = vpop.f32.mrb[11].mxu0 }
 0x11a   :  { %v303_v47 = vpack.c.bf16 %v271_v46, %v268_v43 }
 0x11c   :  { %1752 = vmatprep.mubr.bf16.mxu1 %v303_v47 }
 0x11d   :  { %1753 = vmatmul.mubr.bf16.gmra.mrb[8].mxu1 %v304_v45 }
 0x11e   :  { %v1726_v48 = vpop.f32.mrb[12].mxu0 }
 0x11f   :  { %v284_v49 = vpop.f32.mrb[13].mxu0 }
 0x120   :  { %v1727_v50 = vpop.f32.mrb[14].mxu0 }
 0x121   :  { %v306_v51 = vpack.c.bf16 %v1727_v50, %v1726_v48  ;;  %v287_v52 = vpop.f32.mrb[15].mxu0 }
 0x122   :  { %v305_v53 = vpack.c.bf16 %v287_v52, %v284_v49 }
 0x124   :  { %1756 = vmatprep.mubr.bf16.mxu1 %v305_v53 }
 0x125   :  { %1757 = vmatmul.mubr.bf16.gmra.mrb[12].mxu1 %v306_v51 }
 0x126   :  { %1808 = vmatprep.mubr.bf16.mxu1 %v2146_v4 }
 0x1e0   :  { %v1746_v61 = vpop.f32.mrb[0].mxu1 }
 0x1e1   :  { %v402_v62 = vadd.f32 %v1746_v61, %v310_v60  ;;  %v393_v63 = vpop.f32.mrb[1].mxu1 }
 0x1e2   :  { %v394_v0 = vadd.f32 %v393_v63, %v310_v60  ;;  %v1747_v1 = vpop.f32.mrb[2].mxu1  ;;  %v2005_v63 = vld [vmem:[%s2424_s4 + $0x40] sm:$0xff]  }
 0x1e3   :  { %v405_v2 = vadd.f32 %v1747_v1, %v310_v60  ;;  %v396_v3 = vpop.f32.mrb[3].mxu1  ;;  %v458_v5 = vmax.f32 %v402_v62, 0.0  ;;  %1824 = vmatprep.subr.bf16.mxu0 %v2005_v63  ;;  %v2008_v1 = vld [vmem:[%s2424_s4 + $0x58] sm:$0xff]  }
 0x1e4   :  { %v397_v4 = vadd.f32 %v396_v3, %v310_v60  ;;  %v456_v7 = vmax.f32 %v394_v0, 0.0  ;;  %v2006_v0 = vld [vmem:[%s2424_s4 + $0x48] sm:$0xff]  }
 0x1e5   :  { %v459_v6 = vmax.f32 %v405_v2, 0.0  ;;  %v2009_v2 = vld [vmem:[%s2424_s4 + $0x60] sm:$0xff]   ;;  %v2010_v3 = vld [vmem:[%s2424_s4 + $0x68] sm:$0xff]  }
 0x1e6   :  { %v457_v8 = vmax.f32 %v397_v4, 0.0  ;;  %v2011_v4 = vld [vmem:[%s2424_s4 + $0x70] sm:$0xff]  }
 0x1e7   :  { %v473_v9 = vpack.c.bf16 %v459_v6, %v458_v5  ;;  %v482_v5 = vsub.s32 1, %v2252_v57 }
 0x1e8   :  { %v472_v10 = vpack.c.bf16 %v457_v8, %v456_v7  ;;  %v1750_v11 = vpop.f32.mrb[4].mxu1 }
 0x1e9   :  { %v418_v12 = vadd.f32 %v1750_v11, %v310_v60  ;;  %v409_v13 = vpop.f32.mrb[5].mxu1  ;;  %v483_v6 = vrot.slane %v2258_v59, %v482_v5 }
 0x1ea   :  { %v410_v16 = vadd.f32 %v409_v13, %v310_v60  ;;  %v1751_v17 = vpop.f32.mrb[6].mxu1  ;;  %1776 = vmatprep.mubr.bf16.mxu0 %v472_v10 }
 0x1eb   :  { %v421_v23 = vadd.f32 %v1751_v17, %v310_v60  ;;  %v412_v24 = vpop.f32.mrb[7].mxu1  ;;  %1777 = vmatmul.mubr.bf16.vlgmr.msra.gmra.mrb[16].mxu0 %v473_v9  ;;  %v462_v26 = vmax.f32 %v418_v12, 0.0 }
 0x1ec   :  { %v413_v25 = vadd.f32 %v412_v24, %v310_v60  ;;  %v460_v28 = vmax.f32 %v410_v16, 0.0  ;;  %1825 = vmatpush3.bf16.msra.mxu0 %v2005_v63 }
 0x1ed   :  { %v463_v27 = vmax.f32 %v421_v23, 0.0  ;;  %1826 = vmatprep.subr.bf16.mxu0 %v2006_v0 }
 0x1ee   :  { %v461_v29 = vmax.f32 %v413_v25, 0.0 }
 0x1ef   :  { %v475_v30 = vpack.c.bf16 %v463_v27, %v462_v26 }
 0x1f0   :  { %v474_v31 = vpack.c.bf16 %v461_v29, %v460_v28  ;;  %v1754_v32 = vpop.f32.mrb[8].mxu1  ;;  %1827 = vmatpush3.bf16.msra.mxu0 %v2006_v0 }
 0x1f1   :  { %v434_v33 = vadd.f32 %v1754_v32, %v310_v60  ;;  %v425_v34 = vpop.f32.mrb[9].mxu1 }
 0x1f2   :  { %v426_v35 = vadd.f32 %v425_v34, %v310_v60  ;;  %v1755_v36 = vpop.f32.mrb[10].mxu1  ;;  %1780 = vmatprep.mubr.bf16.mxu0 %v474_v31 }
 0x1f3   :  { %v437_v37 = vadd.f32 %v1755_v36, %v310_v60  ;;  %v428_v38 = vpop.f32.mrb[11].mxu1  ;;  %1781 = vmatmul.mubr.bf16.gmra.mrb[20].mxu0 %v475_v30  ;;  %v466_v40 = vmax.f32 %v434_v33, 0.0 }
 0x1f4   :  { %v429_v39 = vadd.f32 %v428_v38, %v310_v60  ;;  %v464_v42 = vmax.f32 %v426_v35, 0.0 }
 0x1f5   :  { %v467_v41 = vmax.f32 %v437_v37, 0.0 }
 0x1f6   :  { %v465_v43 = vmax.f32 %v429_v39, 0.0 }
 0x1f7   :  { %v477_v44 = vpack.c.bf16 %v467_v41, %v466_v40 }
 0x1f8   :  { %v476_v45 = vpack.c.bf16 %v465_v43, %v464_v42  ;;  %v1758_v46 = vpop.f32.mrb[12].mxu1 }
 0x1f9   :  { %v450_v47 = vadd.f32 %v1758_v46, %v310_v60  ;;  %v441_v48 = vpop.f32.mrb[13].mxu1 }
 0x1fa   :  { %v442_v49 = vadd.f32 %v441_v48, %v310_v60  ;;  %v1759_v50 = vpop.f32.mrb[14].mxu1  ;;  %1784 = vmatprep.mubr.bf16.mxu0 %v476_v45 }
 0x1fb   :  { %v453_v51 = vadd.f32 %v1759_v50, %v310_v60  ;;  %v444_v52 = vpop.f32.mrb[15].mxu1  ;;  %1785 = vmatmul.mubr.bf16.gmra.mrb[24].mxu0 %v477_v44  ;;  %v470_v54 = vmax.f32 %v450_v47, 0.0 }
 0x1fc   :  { %v445_v53 = vadd.f32 %v444_v52, %v310_v60  ;;  %v468_v56 = vmax.f32 %v442_v49, 0.0  ;;  %v2007_v60 = vld [vmem:[%s2424_s4 + $0x50] sm:$0xff]  }
 0x1fd   :  { %v471_v55 = vmax.f32 %v453_v51, 0.0  ;;  %1828 = vmatprep.subr.bf16.mxu0 %v2007_v60 }
 0x1fe   :  { %v469_v58 = vmax.f32 %v445_v53, 0.0  ;;  %1829 = vmatpush3.bf16.msra.mxu0 %v2007_v60 }
 0x1ff   :  { %v479_v61 = vpack.c.bf16 %v471_v55, %v470_v54  ;;  %1830 = vmatprep.subr.bf16.mxu0 %v2008_v1  ;;  %v2012_v54 = vld [vmem:[%s2424_s4 + $0x78] sm:$0xff]  }
 0x200   :  { %v478_v62 = vpack.c.bf16 %v469_v58, %v468_v56 }
 0x202   :  { %1788 = vmatprep.mubr.bf16.mxu0 %v478_v62  ;;  %1831 = vmatpush3.bf16.msra.mxu0 %v2008_v1 }
 0x203   :  { %1789 = vmatmul.mubr.bf16.gmra.mrb[28].mxu0 %v479_v61  ;;  %1832 = vmatprep.subr.bf16.mxu0 %v2009_v2 }
 0x206   :  { %1833 = vmatpush3.bf16.msra.mxu0 %v2009_v2 }
 0x207   :  { %1834 = vmatprep.subr.bf16.mxu0 %v2010_v3 }
 0x20a   :  { %1835 = vmatpush3.bf16.msra.mxu0 %v2010_v3 }
 0x20b   :  { %1836 = vmatprep.subr.bf16.mxu0 %v2011_v4 }
 0x20e   :  { %1837 = vmatpush3.bf16.msra.mxu0 %v2011_v4 }
 0x20f   :  { %1838 = vmatprep.subr.bf16.mxu0 %v2012_v54 }
 0x212   :  { %1839 = vmatpush3.bf16.msra.mxu0 %v2012_v54 }
 0x2be   :  { %v1778_v7 = vpop.f32.mrb[16].mxu0 }
 0x2bf   :  { %v566_v8 = vpop.f32.mrb[17].mxu0  ;;  %v575_v10 = vadd.f32 %v1778_v7, %v483_v6 }
 0x2c0   :  { %v1779_v9 = vpop.f32.mrb[18].mxu0  ;;  %v567_v13 = vadd.f32 %v566_v8, %v483_v6 }
 0x2c1   :  { %v578_v11 = vadd.f32 %v1779_v9, %v483_v6  ;;  %v569_v12 = vpop.f32.mrb[19].mxu0 }
 0x2c2   :  { %v570_v16 = vadd.f32 %v569_v12, %v483_v6 }
 0x2c3   :  { %v630_v17 = vpack.c.bf16 %v578_v11, %v575_v10 }
 0x2c4   :  { %v629_v23 = vpack.c.bf16 %v570_v16, %v567_v13 }
 0x2c6   :  { %v1782_v24 = vpop.f32.mrb[20].mxu0  ;;  %1792 = vmatprep.subr.bf16.mxu1 %v629_v23 }
 0x2c7   :  { %v582_v25 = vpop.f32.mrb[21].mxu0  ;;  %1793 = vmatpush3.bf16.msra.mxu1 %v629_v23  ;;  %v591_v27 = vadd.f32 %v1782_v24, %v483_v6  ;;  %v2019_v23 = vld [vmem:[%s2424_s4 + $0xb0] sm:$0xff]   ;;  %v2020_v24 = vld [vmem:[%s2424_s4 + $0xb8] sm:$0xff]  }
 0x2c8   :  { %v1783_v26 = vpop.f32.mrb[22].mxu0  ;;  %1794 = vmatprep.subr.bf16.mxu1 %v630_v17  ;;  %v583_v30 = vadd.f32 %v582_v25, %v483_v6  ;;  %v776_v25 = vsub.s32 2, %v2252_v57 }
 0x2c9   :  { %v594_v28 = vadd.f32 %v1783_v26, %v483_v6  ;;  %v585_v29 = vpop.f32.mrb[23].mxu0 }
 0x2ca   :  { %v586_v31 = vadd.f32 %v585_v29, %v483_v6  ;;  %v777_v26 = vrot.slane %v2258_v59, %v776_v25  ;;  %v2029_v25 = vld [vmem:[%s2424_s4 + $0x118] sm:$0xff]  }
 0x2cb   :  { %v632_v32 = vpack.c.bf16 %v594_v28, %v591_v27  ;;  %1795 = vmatpush3.bf16.msra.mxu1 %v630_v17 }
 0x2cc   :  { %v631_v33 = vpack.c.bf16 %v586_v31, %v583_v30 }
 0x2ce   :  { %v1786_v34 = vpop.f32.mrb[24].mxu0  ;;  %1796 = vmatprep.subr.bf16.mxu1 %v631_v33 }
 0x2cf   :  { %v598_v35 = vpop.f32.mrb[25].mxu0  ;;  %1797 = vmatpush3.bf16.msra.mxu1 %v631_v33  ;;  %v607_v37 = vadd.f32 %v1786_v34, %v483_v6 }
 0x2d0   :  { %v1787_v36 = vpop.f32.mrb[26].mxu0  ;;  %1798 = vmatprep.subr.bf16.mxu1 %v632_v32  ;;  %v599_v40 = vadd.f32 %v598_v35, %v483_v6 }
 0x2d1   :  { %v610_v38 = vadd.f32 %v1787_v36, %v483_v6  ;;  %v601_v39 = vpop.f32.mrb[27].mxu0 }
 0x2d2   :  { %v602_v41 = vadd.f32 %v601_v39, %v483_v6 }
 0x2d3   :  { %v634_v42 = vpack.c.bf16 %v610_v38, %v607_v37  ;;  %1799 = vmatpush3.bf16.msra.mxu1 %v632_v32 }
 0x2d4   :  { %v633_v43 = vpack.c.bf16 %v602_v41, %v599_v40 }
 0x2d6   :  { %v1790_v44 = vpop.f32.mrb[28].mxu0  ;;  %1800 = vmatprep.subr.bf16.mxu1 %v633_v43 }
 0x2d7   :  { %v614_v45 = vpop.f32.mrb[29].mxu0  ;;  %1801 = vmatpush3.bf16.msra.mxu1 %v633_v43  ;;  %v623_v47 = vadd.f32 %v1790_v44, %v483_v6 }
 0x2d8   :  { %v1791_v46 = vpop.f32.mrb[30].mxu0  ;;  %1802 = vmatprep.subr.bf16.mxu1 %v634_v42  ;;  %v615_v50 = vadd.f32 %v614_v45, %v483_v6 }
 0x2d9   :  { %v626_v48 = vadd.f32 %v1791_v46, %v483_v6  ;;  %v617_v49 = vpop.f32.mrb[31].mxu0 }
 0x2da   :  { %v618_v51 = vadd.f32 %v617_v49, %v483_v6 }
 0x2db   :  { %v636_v52 = vpack.c.bf16 %v626_v48, %v623_v47  ;;  %1803 = vmatpush3.bf16.msra.mxu1 %v634_v42 }
 0x2dc   :  { %v635_v53 = vpack.c.bf16 %v618_v51, %v615_v50 }
 0x2de   :  { %1804 = vmatprep.subr.bf16.mxu1 %v635_v53 }
 0x2df   :  { %1805 = vmatpush3.bf16.msra.mxu1 %v635_v53 }
 0x2e0   :  { %1806 = vmatprep.subr.bf16.mxu1 %v636_v52 }
 0x2e3   :  { %1807 = vmatpush3.bf16.msra.mxu1 %v636_v52 }
 0x2e6   :  { %1809 = vmatmul.mubr.bf16.vlgmr.msra.gmra.mrb[16].mxu1 %v2179_v14  ;;  %v2013_v14 = vld [vmem:[%s2424_s4 + $0x80] sm:$0xff]  }
 0x2e7   :  { %1812 = vmatprep.mubr.bf16.mxu1 %v2184_v15  ;;  %v2014_v15 = vld [vmem:[%s2424_s4 + $0x88] sm:$0xff]   ;;  %1856 = vmatprep.subr.bf16.mxu1 %v2013_v14 }
 0x2e8   :  { %1857 = vmatpush3.bf16.msra.mxu1 %v2013_v14 }
 0x2e9   :  { %1858 = vmatprep.subr.bf16.mxu1 %v2014_v15 }
 0x2ec   :  { %1859 = vmatpush3.bf16.msra.mxu1 %v2014_v15 }
 0x2ee   :  { %1813 = vmatmul.mubr.bf16.gmra.mrb[20].mxu1 %v2197_v18  ;;  %v2015_v18 = vld [vmem:[%s2424_s4 + $0x90] sm:$0xff]  }
 0x2ef   :  { %1816 = vmatprep.mubr.bf16.mxu1 %v2202_v19  ;;  %1860 = vmatprep.subr.bf16.mxu1 %v2015_v18  ;;  %v2016_v19 = vld [vmem:[%s2424_s4 + $0x98] sm:$0xff]  }
 0x2f0   :  { %1861 = vmatpush3.bf16.msra.mxu1 %v2015_v18 }
 0x2f1   :  { %1862 = vmatprep.subr.bf16.mxu1 %v2016_v19 }
 0x2f4   :  { %1863 = vmatpush3.bf16.msra.mxu1 %v2016_v19 }
 0x2f6   :  { %1817 = vmatmul.mubr.bf16.gmra.mrb[24].mxu1 %v2209_v20  ;;  %v2017_v20 = vld [vmem:[%s2424_s4 + $0xa0] sm:$0xff]  }
 0x2f7   :  { %1820 = vmatprep.mubr.bf16.mxu1 %v2214_v21  ;;  %1864 = vmatprep.subr.bf16.mxu1 %v2017_v20  ;;  %v2018_v21 = vld [vmem:[%s2424_s4 + $0xa8] sm:$0xff]  }
 0x2f8   :  { %1865 = vmatpush3.bf16.msra.mxu1 %v2017_v20 }
 0x2f9   :  { %1866 = vmatprep.subr.bf16.mxu1 %v2018_v21 }
 0x2fc   :  { %1867 = vmatpush3.bf16.msra.mxu1 %v2018_v21 }
 0x2fd   :  { %1868 = vmatprep.subr.bf16.mxu1 %v2019_v23 }
 0x2fe   :  { %1821 = vmatmul.mubr.bf16.gmra.mrb[28].mxu1 %v2221_v22 }
 0x300   :  { %1869 = vmatpush3.bf16.msra.mxu1 %v2019_v23  ;;  %v2025_v23 = vld [vmem:[%s2424_s4 + $0x108] sm:$0xff]  }
 0x301   :  { %1870 = vmatprep.subr.bf16.mxu1 %v2020_v24 }
 0x304   :  { %1871 = vmatpush3.bf16.msra.mxu1 %v2020_v24  ;;  %v2027_v24 = vld [vmem:[%s2424_s4 + $0x110] sm:$0xff]  }
 0x3b9   :  { %v1810_v22 = vpop.f32.mrb[16].mxu1 }
 0x3ba   :  { %v703_v55 = vpop.f32.mrb[17].mxu1 }
 0x3bb   :  { %v1811_v56 = vpop.f32.mrb[18].mxu1 }
 0x3bc   :  { %v767_v58 = vpack.c.bf16 %v1811_v56, %v1810_v22  ;;  %v706_v61 = vpop.f32.mrb[19].mxu1 }
 0x3bd   :  { %v766_v62 = vpack.c.bf16 %v706_v61, %v703_v55 }
 0x3bf   :  { %1840 = vmatprep.mubr.bf16.mxu0 %v766_v62 }
 0x3c0   :  { %1841 = vmatmul.mubr.bf16.vlgmr.msra.gmra.mrb[32].mxu0 %v767_v58 }
 0x3c1   :  { %v1814_v63 = vpop.f32.mrb[20].mxu1 }
 0x3c2   :  { %v719_v0 = vpop.f32.mrb[21].mxu1 }
 0x3c3   :  { %v1815_v60 = vpop.f32.mrb[22].mxu1 }
 0x3c4   :  { %v769_v1 = vpack.c.bf16 %v1815_v60, %v1814_v63  ;;  %v722_v2 = vpop.f32.mrb[23].mxu1 }
 0x3c5   :  { %v768_v3 = vpack.c.bf16 %v722_v2, %v719_v0 }
 0x3c7   :  { %1844 = vmatprep.mubr.bf16.mxu0 %v768_v3 }
 0x3c8   :  { %1845 = vmatmul.mubr.bf16.gmra.mrb[36].mxu0 %v769_v1 }
 0x3c9   :  { %v1818_v4 = vpop.f32.mrb[24].mxu1 }
 0x3ca   :  { %v735_v5 = vpop.f32.mrb[25].mxu1 }
 0x3cb   :  { %v1819_v6 = vpop.f32.mrb[26].mxu1 }
 0x3cc   :  { %v771_v7 = vpack.c.bf16 %v1819_v6, %v1818_v4  ;;  %v738_v8 = vpop.f32.mrb[27].mxu1 }
 0x3cd   :  { %v770_v9 = vpack.c.bf16 %v738_v8, %v735_v5 }
 0x3cf   :  { %1848 = vmatprep.mubr.bf16.mxu0 %v770_v9 }
 0x3d0   :  { %1849 = vmatmul.mubr.bf16.gmra.mrb[40].mxu0 %v771_v7 }
 0x3d1   :  { %v1822_v10 = vpop.f32.mrb[28].mxu1 }
 0x3d2   :  { %v751_v11 = vpop.f32.mrb[29].mxu1 }
 0x3d3   :  { %v1823_v12 = vpop.f32.mrb[30].mxu1 }
 0x3d4   :  { %v773_v13 = vpack.c.bf16 %v1823_v12, %v1822_v10  ;;  %v754_v16 = vpop.f32.mrb[31].mxu1 }
 0x3d5   :  { %v772_v17 = vpack.c.bf16 %v754_v16, %v751_v11  ;;  %v2077_v16 = vmov 0.0  }
 0x3d6   :  { %1888 = vmatprep.subr.bf16.mxu0 %v2077_v16  ;;  %1908 = vmatprep.subr.bf16.mxu1 %v2077_v16 }
 0x3d7   :  { %1852 = vmatprep.mubr.bf16.mxu0 %v772_v17  ;;  %v2023_v17 = vld [vmem:[%s2424_s4 + $0x100] sm:$0xff]  }
 0x3d8   :  { %1853 = vmatmul.mubr.bf16.gmra.mrb[44].mxu0 %v773_v13 }
 0x3d9   :  { %1904 = vmatprep.mubr.msk.bf16.mxu0 %vm2078_vm0, %v2077_v16 }
 0x493   :  { %v1842_v27 = vpop.f32.mrb[32].mxu0 }
 0x494   :  { %v869_v28 = vadd.f32 %v1842_v27, %v777_v26  ;;  %v860_v29 = vpop.f32.mrb[33].mxu0  ;;  %v2033_v27 = vld [vmem:[%s2424_s4 + $0x128] sm:$0xff]  }
 0x495   :  { %v861_v30 = vadd.f32 %v860_v29, %v777_v26  ;;  %v1843_v31 = vpop.f32.mrb[34].mxu0  ;;  %v949_v29 = vsub.s32 3, %v2252_v57 }
 0x496   :  { %v872_v32 = vadd.f32 %v1843_v31, %v777_v26  ;;  %v863_v33 = vpop.f32.mrb[35].mxu0  ;;  %v925_v35 = vmax.f32 %v869_v28, 0.0  ;;  %v2035_v28 = vld [vmem:[%s2424_s4 + $0x130] sm:$0xff]  }
 0x497   :  { %v864_v34 = vadd.f32 %v863_v33, %v777_v26  ;;  %v923_v37 = vmax.f32 %v861_v30, 0.0  ;;  %v950_v30 = vrot.slane %v2258_v59, %v949_v29  ;;  %v2041_v29 = vld [vmem:[#allocation2 + $0x18] sm:$0xff]  }
 0x498   :  { %v926_v36 = vmax.f32 %v872_v32, 0.0 }
 0x499   :  { %v924_v38 = vmax.f32 %v864_v34, 0.0 }
 0x49a   :  { %v940_v39 = vpack.c.bf16 %v926_v36, %v925_v35 }
 0x49b   :  { %v939_v40 = vpack.c.bf16 %v924_v38, %v923_v37  ;;  %v1846_v41 = vpop.f32.mrb[36].mxu0 }
 0x49c   :  { %v885_v42 = vadd.f32 %v1846_v41, %v777_v26  ;;  %v876_v43 = vpop.f32.mrb[37].mxu0 }
 0x49d   :  { %v877_v44 = vadd.f32 %v876_v43, %v777_v26  ;;  %v1847_v45 = vpop.f32.mrb[38].mxu0  ;;  %1872 = vmatprep.mubr.bf16.mxu1 %v939_v40 }
 0x49e   :  { %v888_v46 = vadd.f32 %v1847_v45, %v777_v26  ;;  %v879_v47 = vpop.f32.mrb[39].mxu0  ;;  %1873 = vmatmul.mubr.bf16.vlgmr.msra.gmra.mrb[32].mxu1 %v940_v39  ;;  %v929_v49 = vmax.f32 %v885_v42, 0.0 }
 0x49f   :  { %v880_v48 = vadd.f32 %v879_v47, %v777_v26  ;;  %v927_v51 = vmax.f32 %v877_v44, 0.0  ;;  %1909 = vmatpush3.bf16.msra.mxu1 %v2023_v17 }
 0x4a0   :  { %v930_v50 = vmax.f32 %v888_v46, 0.0  ;;  %1910 = vmatprep.subr.bf16.mxu1 %v2077_v16 }
 0x4a1   :  { %v928_v52 = vmax.f32 %v880_v48, 0.0 }
 0x4a2   :  { %v942_v53 = vpack.c.bf16 %v930_v50, %v929_v49 }
 0x4a3   :  { %v941_v54 = vpack.c.bf16 %v928_v52, %v927_v51  ;;  %v1850_v14 = vpop.f32.mrb[40].mxu0  ;;  %1911 = vmatpush3.bf16.msra.mxu1 %v2025_v23 }
 0x4a4   :  { %v901_v15 = vadd.f32 %v1850_v14, %v777_v26  ;;  %v892_v18 = vpop.f32.mrb[41].mxu0  ;;  %1912 = vmatprep.subr.bf16.mxu1 %v2077_v16 }
 0x4a5   :  { %v893_v19 = vadd.f32 %v892_v18, %v777_v26  ;;  %v1851_v20 = vpop.f32.mrb[42].mxu0  ;;  %1876 = vmatprep.mubr.bf16.mxu1 %v941_v54 }
 0x4a6   :  { %v904_v21 = vadd.f32 %v1851_v20, %v777_v26  ;;  %v895_v22 = vpop.f32.mrb[43].mxu0  ;;  %1877 = vmatmul.mubr.bf16.gmra.mrb[36].mxu1 %v942_v53  ;;  %v933_v56 = vmax.f32 %v901_v15, 0.0 }
 0x4a7   :  { %v896_v55 = vadd.f32 %v895_v22, %v777_v26  ;;  %v931_v61 = vmax.f32 %v893_v19, 0.0  ;;  %1913 = vmatpush3.bf16.msra.mxu1 %v2027_v24  ;;  %v2038_v24 = vld [vmem:[#allocation2] sm:$0xff]  }
 0x4a8   :  { %v934_v58 = vmax.f32 %v904_v21, 0.0  ;;  %1914 = vmatprep.subr.bf16.mxu1 %v2077_v16 }
 0x4a9   :  { %v932_v62 = vmax.f32 %v896_v55, 0.0 }
 0x4aa   :  { %v944_v63 = vpack.c.bf16 %v934_v58, %v933_v56 }
 0x4ab   :  { %v943_v0 = vpack.c.bf16 %v932_v62, %v931_v61  ;;  %v1854_v60 = vpop.f32.mrb[44].mxu0  ;;  %1915 = vmatpush3.bf16.msra.mxu1 %v2029_v25 }
 0x4ac   :  { %v917_v1 = vadd.f32 %v1854_v60, %v777_v26  ;;  %v908_v2 = vpop.f32.mrb[45].mxu0  ;;  %1916 = vmatprep.subr.bf16.mxu1 %v2077_v16 }
 0x4ad   :  { %v909_v3 = vadd.f32 %v908_v2, %v777_v26  ;;  %v1855_v4 = vpop.f32.mrb[46].mxu0  ;;  %1880 = vmatprep.mubr.bf16.mxu1 %v943_v0  ;;  %v2021_v2 = vld [vmem:[%s2422_s2] sm:$0xff]  }
 0x4ae   :  { %v920_v5 = vadd.f32 %v1855_v4, %v777_v26  ;;  %v911_v6 = vpop.f32.mrb[47].mxu0  ;;  %1881 = vmatmul.mubr.bf16.gmra.mrb[40].mxu1 %v944_v63  ;;  %v937_v8 = vmax.f32 %v917_v1, 0.0  ;;  %v2024_v4 = vld [vmem:[%s2424_s4 + $0xc8] sm:$0xff]  }
 0x4af   :  { %v912_v7 = vadd.f32 %v911_v6, %v777_v26  ;;  %v935_v10 = vmax.f32 %v909_v3, 0.0  ;;  %v2031_v26 = vld [vmem:[%s2424_s4 + $0x120] sm:$0xff]   ;;  %v2028_v6 = vld [vmem:[%s2424_s4 + $0xd8] sm:$0xff]  }
 0x4b0   :  { %v938_v9 = vmax.f32 %v920_v5, 0.0  ;;  %1917 = vmatpush3.bf16.msra.mxu1 %v2031_v26  ;;  %v2022_v3 = vld [vmem:[%s2424_s4 + $0xc0] sm:$0xff]   ;;  %v2026_v5 = vld [vmem:[%s2424_s4 + $0xd0] sm:$0xff]  }
 0x4b1   :  { %v936_v11 = vmax.f32 %v912_v7, 0.0  ;;  %1918 = vmatprep.subr.bf16.mxu1 %v2077_v16  ;;  %v2030_v7 = vld [vmem:[%s2424_s4 + $0xe0] sm:$0xff]  }
 0x4b2   :  { %v946_v12 = vpack.c.bf16 %v938_v9, %v937_v8  ;;  %v2032_v8 = vld [vmem:[%s2424_s4 + $0xe8] sm:$0xff]   ;;  %v2034_v9 = vld [vmem:[%s2424_s4 + $0xf0] sm:$0xff]  }
 0x4b3   :  { %v945_v13 = vpack.c.bf16 %v936_v11, %v935_v10  ;;  %v2036_v10 = vld [vmem:[%s2424_s4 + $0xf8] sm:$0xff]  }
 0x4b4   :  { %1919 = vmatpush3.bf16.msra.mxu1 %v2033_v27  ;;  %v2037_v11 = vld [vmem:[%s2424_s4 + $0x138] sm:$0xff]   ;;  %v2039_v27 = vld [vmem:[#allocation2 + $0x8] sm:$0xff]  }
 0x4b5   :  { %1884 = vmatprep.mubr.bf16.mxu1 %v945_v13  ;;  %1920 = vmatprep.subr.bf16.mxu1 %v2077_v16 }
 0x4b6   :  { %1885 = vmatmul.mubr.bf16.gmra.mrb[44].mxu1 %v946_v12 }
 0x4b7   :  { %1924 = vmatprep.mubr.msk.bf16.mxu1 %vm2078_vm0, %v2077_v16 }
 0x4b8   :  { %1921 = vmatpush3.bf16.msra.mxu1 %v2035_v28  ;;  %v2040_v28 = vld [vmem:[#allocation2 + $0x10] sm:$0xff]  }
 0x4b9   :  { %1922 = vmatprep.subr.bf16.mxu1 %v2077_v16 }
 0x4bc   :  { %1923 = vmatpush3.bf16.msra.mxu1 %v2037_v11 }
 0x4bd   :  { %1948 = vmatprep.subr.bf16.mxu1 %v2077_v16 }
 0x571   :  { %v1874_v31 = vpop.f32.mrb[32].mxu1 }
 0x572   :  { %v1033_v32 = vpop.f32.mrb[33].mxu1  ;;  %v1042_v34 = vadd.f32 %v1874_v31, %v950_v30  ;;  %v2043_v31 = vld [vmem:[#allocation2 + $0x28] sm:$0xff]  }
 0x573   :  { %v1875_v33 = vpop.f32.mrb[34].mxu1  ;;  %v1034_v37 = vadd.f32 %v1033_v32, %v950_v30  ;;  %v2044_v32 = vld [vmem:[#allocation2 + $0x30] sm:$0xff]  }
 0x574   :  { %v1045_v35 = vadd.f32 %v1875_v33, %v950_v30  ;;  %v1036_v36 = vpop.f32.mrb[35].mxu1  ;;  %v2045_v33 = vld [vmem:[#allocation2 + $0x38] sm:$0xff]  }
 0x575   :  { %v1037_v38 = vadd.f32 %v1036_v36, %v950_v30 }
 0x576   :  { %v1097_v39 = vpack.c.bf16 %v1045_v35, %v1042_v34  ;;  %v1365_v34 = vsub.s32 4, %v2252_v57 }
 0x577   :  { %v1096_v40 = vpack.c.bf16 %v1037_v38, %v1034_v37 }
 0x578   :  { %v1366_v37 = vrot.slane %v2258_v59, %v1365_v34 }
 0x579   :  { %v1878_v41 = vpop.f32.mrb[36].mxu1  ;;  %1889 = vmatpush3.bf16.msra.mxu0 %v1096_v40 }
 0x57a   :  { %v1049_v42 = vpop.f32.mrb[37].mxu1  ;;  %1890 = vmatprep.subr.bf16.mxu0 %v2077_v16  ;;  %v1058_v44 = vadd.f32 %v1878_v41, %v950_v30 }
 0x57b   :  { %v1879_v43 = vpop.f32.mrb[38].mxu1  ;;  %v1050_v47 = vadd.f32 %v1049_v42, %v950_v30 }
 0x57c   :  { %v1061_v45 = vadd.f32 %v1879_v43, %v950_v30  ;;  %v1052_v46 = vpop.f32.mrb[39].mxu1 }
 0x57d   :  { %v1053_v48 = vadd.f32 %v1052_v46, %v950_v30  ;;  %1891 = vmatpush3.bf16.msra.mxu0 %v1097_v39 }
 0x57e   :  { %v1099_v49 = vpack.c.bf16 %v1061_v45, %v1058_v44  ;;  %1892 = vmatprep.subr.bf16.mxu0 %v2077_v16 }
 0x57f   :  { %v1098_v50 = vpack.c.bf16 %v1053_v48, %v1050_v47 }
 0x581   :  { %v1882_v51 = vpop.f32.mrb[40].mxu1  ;;  %1893 = vmatpush3.bf16.msra.mxu0 %v1098_v50 }
 0x582   :  { %v1065_v52 = vpop.f32.mrb[41].mxu1  ;;  %1894 = vmatprep.subr.bf16.mxu0 %v2077_v16  ;;  %v1074_v54 = vadd.f32 %v1882_v51, %v950_v30 }
 0x583   :  { %v1883_v53 = vpop.f32.mrb[42].mxu1  ;;  %v1066_v18 = vadd.f32 %v1065_v52, %v950_v30 }
 0x584   :  { %v1077_v14 = vadd.f32 %v1883_v53, %v950_v30  ;;  %v1068_v15 = vpop.f32.mrb[43].mxu1 }
 0x585   :  { %v1069_v19 = vadd.f32 %v1068_v15, %v950_v30  ;;  %1895 = vmatpush3.bf16.msra.mxu0 %v1099_v49 }
 0x586   :  { %v1101_v20 = vpack.c.bf16 %v1077_v14, %v1074_v54  ;;  %1896 = vmatprep.subr.bf16.mxu0 %v2077_v16 }
 0x587   :  { %v1100_v21 = vpack.c.bf16 %v1069_v19, %v1066_v18 }
 0x589   :  { %v1886_v22 = vpop.f32.mrb[44].mxu1  ;;  %1897 = vmatpush3.bf16.msra.mxu0 %v1100_v21 }
 0x58a   :  { %v1081_v55 = vpop.f32.mrb[45].mxu1  ;;  %1898 = vmatprep.subr.bf16.mxu0 %v2077_v16  ;;  %v1090_v58 = vadd.f32 %v1886_v22, %v950_v30 }
 0x58b   :  { %v1887_v56 = vpop.f32.mrb[46].mxu1  ;;  %v1082_v63 = vadd.f32 %v1081_v55, %v950_v30 }
 0x58c   :  { %v1093_v61 = vadd.f32 %v1887_v56, %v950_v30  ;;  %v1084_v62 = vpop.f32.mrb[47].mxu1 }
 0x58d   :  { %v1085_v0 = vadd.f32 %v1084_v62, %v950_v30  ;;  %1899 = vmatpush3.bf16.msra.mxu0 %v1101_v20  ;;  %v2042_v30 = vld [vmem:[#allocation2 + $0x20] sm:$0xff]  }
 0x58e   :  { %v1103_v60 = vpack.c.bf16 %v1093_v61, %v1090_v58  ;;  %1900 = vmatprep.subr.bf16.mxu0 %v2077_v16 }
 0x58f   :  { %v1102_v1 = vpack.c.bf16 %v1085_v0, %v1082_v63 }
 0x591   :  { %1901 = vmatpush3.bf16.msra.mxu0 %v1102_v1 }
 0x592   :  { %1902 = vmatprep.subr.bf16.mxu0 %v2077_v16 }
 0x595   :  { %1903 = vmatpush3.bf16.msra.mxu0 %v1103_v60 }
 0x596   :  { %1928 = vmatprep.subr.bf16.mxu0 %v2077_v16 }
 0x598   :  { %1905 = vmatmul.mubr.bf16.vlgmr.msra.gmra.mrb[48].mxu0 %v2021_v2 }
 0x599   :  { %1929 = vmatpush3.bf16.msra.mxu0 %v2022_v3  ;;  %1944 = vmatprep.mubr.msk.bf16.mxu0 %vm2078_vm0, %v2077_v16 }
 0x59a   :  { %1930 = vmatprep.subr.bf16.mxu0 %v2077_v16 }
 0x59d   :  { %1931 = vmatpush3.bf16.msra.mxu0 %v2024_v4 }
 0x59e   :  { %1932 = vmatprep.subr.bf16.mxu0 %v2077_v16 }
 0x5a1   :  { %1933 = vmatpush3.bf16.msra.mxu0 %v2026_v5 }
 0x5a2   :  { %1934 = vmatprep.subr.bf16.mxu0 %v2077_v16 }
 0x5a5   :  { %1935 = vmatpush3.bf16.msra.mxu0 %v2028_v6 }
 0x5a6   :  { %1936 = vmatprep.subr.bf16.mxu0 %v2077_v16 }
 0x5a9   :  { %1937 = vmatpush3.bf16.msra.mxu0 %v2030_v7 }
 0x5aa   :  { %1938 = vmatprep.subr.bf16.mxu0 %v2077_v16 }
 0x5ad   :  { %1939 = vmatpush3.bf16.msra.mxu0 %v2032_v8 }
 0x5ae   :  { %1940 = vmatprep.subr.bf16.mxu0 %v2077_v16 }
 0x5b1   :  { %1941 = vmatpush3.bf16.msra.mxu0 %v2034_v9 }
 0x5b2   :  { %1942 = vmatprep.subr.bf16.mxu0 %v2077_v16 }
 0x5b5   :  { %1943 = vmatpush3.bf16.msra.mxu0 %v2036_v10 }
 0x66b   :  { %v1146_v12 = vpop.f32.mrb[48].mxu0 }
 0x66c   :  { %v1153_v13 = vpack.c.bf16 %v1146_v12, %v1146_v12  ;;  %v1906_v17 = vpop.f32.mrb[49].mxu0 }
 0x66d   :  { %v1149_v23 = vpop.f32.mrb[50].mxu0 }
 0x66e   :  { %v1154_v25 = vpack.c.bf16 %v1149_v23, %v1149_v23  ;;  %v1907_v26 = vpop.f32.mrb[51].mxu0  ;;  %1945 = vmatmul.mubr.bf16.vlgmr.msra.gmra.mrb[52].mxu0 %v1153_v13 }
 0x670   :  { %1925 = vmatmul.mubr.bf16.vlgmr.msra.gmra.mrb[48].mxu1 %v1154_v25 }
 0x671   :  { %1949 = vmatpush3.bf16.msra.mxu1 %v2038_v24  ;;  %1964 = vmatprep.mubr.msk.bf16.mxu1 %vm2078_vm0, %v2077_v16 }
 0x672   :  { %1950 = vmatprep.subr.bf16.mxu1 %v2077_v16 }
 0x675   :  { %1951 = vmatpush3.bf16.msra.mxu1 %v2039_v27 }
 0x676   :  { %1952 = vmatprep.subr.bf16.mxu1 %v2077_v16 }
 0x679   :  { %1953 = vmatpush3.bf16.msra.mxu1 %v2040_v28 }
 0x67a   :  { %1954 = vmatprep.subr.bf16.mxu1 %v2077_v16 }
 0x67d   :  { %1955 = vmatpush3.bf16.msra.mxu1 %v2041_v29 }
 0x67e   :  { %1956 = vmatprep.subr.bf16.mxu1 %v2077_v16 }
 0x681   :  { %1957 = vmatpush3.bf16.msra.mxu1 %v2042_v30 }
 0x682   :  { %1958 = vmatprep.subr.bf16.mxu1 %v2077_v16 }
 0x685   :  { %1959 = vmatpush3.bf16.msra.mxu1 %v2043_v31 }
 0x686   :  { %1960 = vmatprep.subr.bf16.mxu1 %v2077_v16 }
 0x689   :  { %1961 = vmatpush3.bf16.msra.mxu1 %v2044_v32 }
 0x68a   :  { %1962 = vmatprep.subr.bf16.mxu1 %v2077_v16  ;;  %v1388_v16 = vsub.s32 5, %v2252_v57 }
 0x68c   :  { %v1389_v48 = vrot.slane %v2258_v59, %v1388_v16 }
 0x68d   :  { %1963 = vmatpush3.bf16.msra.mxu1 %v2045_v33 }
 0x741   :  { %v1357_v35 = vpop.f32.mrb[52].mxu0 }
 0x742   :  { %v1946_v36 = vpop.f32.mrb[53].mxu0 }
 0x743   :  { %v1269_v38 = vpop.f32.mrb[48].mxu1  ;;  %v1360_v39 = vpop.f32.mrb[54].mxu0 }
 0x744   :  { %v1358_v40 = vadd.f32 %v1357_v35, %v1269_v38  ;;  %v1926_v41 = vpop.f32.mrb[49].mxu1  ;;  %v1947_v42 = vpop.f32.mrb[55].mxu0 }
 0x745   :  { %v1272_v43 = vpop.f32.mrb[50].mxu1 }
 0x746   :  { %v1367_v44 = vadd.f32 %v1366_v37, %v1358_v40  ;;  %v1927_v45 = vpop.f32.mrb[51].mxu1 }
 0x748   :  { %v1368_v46 = vmax.f32 %v1367_v44, 0.0 }
 0x74a   :  { %v1369_v47 = vpack.c.bf16 %v1368_v46, %v1368_v46 }
 0x74c   :  { %1965 = vmatmul.mubr.bf16.vlgmr.msra.gmra.mrb[52].mxu1 %v1369_v47 }
 0x81f   :  { %v1472_v49 = vpop.f32.mrb[52].mxu1 }
 0x820   :  { %v1473_v50 = vadd.f32 %v1472_v49, %v1389_v48  ;;  %v1966_v51 = vpop.f32.mrb[53].mxu1 }
 0x821   :  { %v1475_v52 = vpop.f32.mrb[54].mxu1 }
 0x822   :  { %v1563_v53 = vmul.f32 -1.442695, %v1473_v50  ;;  %v1967_v54 = vpop.f32.mrb[55].mxu1 }
 0x824   :  { %2046 = vpow2.f32 %v1563_v53 }
 0x82e   :  { %v2047_v14 = vpop.eup %2046 }
 0x82f   :  { %v1481_v15 = vadd.f32 1.0, %v2047_v14 }
 0x831   :  { %2048 = vrcp.f32 %v1481_v15 }
 0x83b   :  { %v2049_v18 = vpop.eup %2048 }
 0x83c   :  { %1484 = vst [vmem:[%s2427_s7] sm:$0xff] %v2049_v18 }
 0x83d   :  { %1489 = vsyncpa [#allocation3], 1 }

</bundles_post_ra>
